<compile_context>
chip_gen: v7x
topology: tpu7x:2x2x1
jax: 0.10.0
libtpu: 0.0.40
codegen_flags: <defaults>
</compile_context>

<pallas_src>
import functools

import jax
import jax.numpy as jnp
from jax.experimental import pallas as pl
from jax.experimental.pallas import tpu as pltpu


def _snu_kernel(x_ref, w_ref, b_ref, out_ref, h_scr, y_scr, *, decay, chunk, batch):
    """One grid step == `chunk` timesteps of the SNU recurrence for one H tile.

    x_ref:   (chunk*B, I)   inputs for this time chunk, rows grouped by timestep
    w_ref:   (I, tH)        weight tile (resident across the time sweep)
    b_ref:   (1, tH)        bias tile
    out_ref: (chunk*B, tH)  spike outputs for this chunk / H tile
    h_scr:   (B, tH)        membrane voltage state (carried across time chunks)
    y_scr:   (B, tH)        previous spike output  (carried across time chunks)
    """
    t = pl.program_id(1)

    # Zero-init the carried state at the start of every time sweep.  VMEM
    # scratch is uninitialized, so this is required for the unified path below.
    @pl.when(t == 0)
    def _():
        h_scr[...] = jnp.zeros_like(h_scr)
        y_scr[...] = jnp.zeros_like(y_scr)

    # One MXU matmul for the whole time chunk: (chunk*B, I) @ (I, tH).
    z = jnp.dot(x_ref[...], w_ref[...], preferred_element_type=jnp.float32)
    # Stage the pre-activations in the output block; rows are overwritten with
    # the spike values by the recurrence below.
    out_ref[...] = z

    # Hoist the bias broadcast out of the time loop (broadcasts are not CSE'd).
    bias = jnp.broadcast_to(b_ref[...], h_scr.shape)

    h = h_scr[...]
    y = y_scr[...]
    # Elementwise recurrence over the chunk — the only truly sequential part.
    # `chunk` is a small static Python int, so this is a fully unrolled loop
    # with static ref slices.
    for tt in range(chunk):
        lo = tt * batch
        z_t = out_ref[lo:lo + batch, :]                       # (B, tH)
        h = jnp.maximum(z_t + decay * h * (1.0 - y), 0.0)     # voltage update
        y = (h + bias > 0.0).astype(jnp.float32)              # Heaviside spike
        out_ref[lo:lo + batch, :] = y
    h_scr[...] = h
    y_scr[...] = y


def _pick_h_tile(hidden):
    """Largest MXU/lane-friendly tile that divides H (else the full H)."""
    for cand in (512, 256, 128):
        if hidden % cand == 0:
            return cand
    return hidden


def _pick_chunk(seq_len, batch):
    """Timesteps per grid step; keep sublane-aligned blocks when T is split."""
    chunk = min(seq_len, 32)
    while chunk < seq_len and (chunk * batch) % 8 != 0:
        chunk += 1
    return chunk


def snu_forward(x, weight, bias, decay):
    """SNU forward.

    Args:
      x:      (B, I, T)  float32 — PyTorch layout (batch, input_size, time)
      weight: (I, H)     float32
      bias:   (1, H)     float32
      decay:  python float
    Returns:
      spikes: (B, H, T)  float32 (values in {0.0, 1.0})
    """
    B, I, T = x.shape
    H = weight.shape[1]

    x = x.astype(jnp.float32)
    weight = weight.astype(jnp.float32)
    bias = bias.astype(jnp.float32)

    chunk = _pick_chunk(T, B)
    n_t = -(-T // chunk)
    t_pad = n_t * chunk
    th = _pick_h_tile(H)
    n_h = H // th

    # Time-major and flattened to 2-D so kernel blocks are lane/sublane dense.
    x_tm = jnp.transpose(x, (2, 0, 1))                         # (T, B, I)
    if t_pad != T:
        pad = jnp.zeros((t_pad - T, B, I), jnp.float32)
        x_tm = jnp.concatenate([x_tm, pad], axis=0)            # (T_pad, B, I)
    x_flat = x_tm.reshape(t_pad * B, I)                        # (T_pad*B, I)

    kernel = functools.partial(
        _snu_kernel, decay=float(decay), chunk=chunk, batch=B)

    out_flat = pl.pallas_call(
        kernel,
        out_shape=jax.ShapeDtypeStruct((t_pad * B, H), jnp.float32),
        grid_spec=pltpu.PrefetchScalarGridSpec(
            num_scalar_prefetch=0,
            grid=(n_h, n_t),
            in_specs=[
                pl.BlockSpec((chunk * B, I), lambda h, t: (t, 0)),  # x chunk
                pl.BlockSpec((I, th), lambda h, t: (0, h)),         # weight tile
                pl.BlockSpec((1, th), lambda h, t: (0, h)),         # bias tile
            ],
            out_specs=pl.BlockSpec((chunk * B, th), lambda h, t: (t, h)),
            scratch_shapes=[
                pltpu.VMEM((B, th), jnp.float32),   # membrane voltage state
                pltpu.VMEM((B, th), jnp.float32),   # previous spike output
            ],
        ),
        compiler_params=pltpu.CompilerParams(
            # H tiles are independent (sharded across TensorCores on v7x);
            # the time axis is a sequential recurrence.
            dimension_semantics=("parallel", "arbitrary"),
        ),
    )(x_flat, weight, bias)

    out = out_flat.reshape(t_pad, B, H)[:T]                    # (T, B, H)
    return jnp.transpose(out, (1, 2, 0))                       # (B, H, T)


def _snu_reference(x, weight, bias, decay):
    """Pure-JAX reference mirroring the PyTorch loop, for correctness check."""
    T = x.shape[2]
    hidden = None
    output = None
    outs = []
    for t in range(T):
        z = x[:, :, t] @ weight
        if hidden is None:
            hidden = jnp.maximum(z, 0.0)
        else:
            hidden = jnp.maximum(z + decay * hidden * (1.0 - output), 0.0)
        output = (hidden + bias > 0.0).astype(jnp.float32)
        outs.append(output[:, :, None])
    return jnp.concatenate(outs, axis=2)


if __name__ == "__main__":
    # Small shapes consistent with the module: x is (batch, input_size, T).
    B, I, H, T = 2, 16, 32, 8
    decay = 0.8

    key = jax.random.PRNGKey(0)
    kx, kw, kb = jax.random.split(key, 3)

    x = jax.random.normal(kx, (B, I, T), dtype=jnp.float32)
    # nn.init.normal_(weight, mean=0.1, std=0.1)
    weight = 0.1 + 0.1 * jax.random.normal(kw, (I, H), dtype=jnp.float32)
    # nn.init.normal_(bias, mean=0.1, std=0.1)
    bias = 0.1 + 0.1 * jax.random.normal(kb, (1, H), dtype=jnp.float32)

    out = snu_forward(x, weight, bias, decay)
    out = jax.block_until_ready(out)

    ref = _snu_reference(x, weight, bias, decay)
    assert out.shape == (B, H, T), out.shape
    assert jnp.allclose(out, ref), "mismatch vs pure-JAX reference"

    print("KERNEL_OK")
</pallas_src>

<mosaic_0001>
module attributes {stable_mosaic.version = 11 : i64} {
  func.func @_snu_kernel(%arg0: i32, %arg1: i32, %arg2: memref<16x16xf32, #tpu.memory_space<vmem>>, %arg3: memref<16x32xf32, #tpu.memory_space<vmem>>, %arg4: memref<1x32xf32, #tpu.memory_space<vmem>>, %arg5: memref<16x32xf32, #tpu.memory_space<vmem>>, %arg6: memref<2x32xf32, #tpu.memory_space<vmem>>, %arg7: memref<2x32xf32, #tpu.memory_space<vmem>>) attributes {dimension_semantics = [#tpu.dimension_semantics<parallel>, #tpu.dimension_semantics<arbitrary>], iteration_bounds = array<i64: 1, 1>, scalar_prefetch = 0 : i64, scratch_operands = 2 : i64, tpu.core_type = #tpu.core_type<tc>, window_params = [{transform_indices = @transform_0, window_bounds = array<i64: 16, 16>}, {transform_indices = @transform_1, window_bounds = array<i64: 16, 32>}, {transform_indices = @transform_2, window_bounds = array<i64: 1, 32>}, {transform_indices = @transform_3, window_bounds = array<i64: 16, 32>}]} {
    %c0_i32 = arith.constant 0 : i32
    %0 = arith.cmpi eq, %arg1, %c0_i32 : i32
    %1 = arith.extui %0 : i1 to i32
    %c0_i32_0 = arith.constant 0 : i32
    %2 = arith.cmpi ne, %1, %c0_i32_0 : i32
    scf.if %2 {
      %cst_73 = arith.constant 0.000000e+00 : f32
      %134 = vector.broadcast %cst_73 : f32 to vector<2x32xf32>
      %c0_74 = arith.constant 0 : index
      %c0_75 = arith.constant 0 : index
      %135 = vector.load %arg6[%c0_74, %c0_75] : memref<2x32xf32, #tpu.memory_space<vmem>>, vector<2x32xf32>
      tpu.vector_store %arg6[%c0_74, %c0_75], %134 {strides = array<i32>} : memref<2x32xf32, #tpu.memory_space<vmem>>, vector<2x32xf32>,
      %cst_76 = arith.constant 0.000000e+00 : f32
      %136 = vector.broadcast %cst_76 : f32 to vector<2x32xf32>
      %c0_77 = arith.constant 0 : index
      %c0_78 = arith.constant 0 : index
      %137 = vector.load %arg7[%c0_77, %c0_78] : memref<2x32xf32, #tpu.memory_space<vmem>>, vector<2x32xf32>
      tpu.vector_store %arg7[%c0_77, %c0_78], %136 {strides = array<i32>} : memref<2x32xf32, #tpu.memory_space<vmem>>, vector<2x32xf32>,
    } else {
    }
    %c0 = arith.constant 0 : index
    %c0_1 = arith.constant 0 : index
    %3 = vector.load %arg2[%c0, %c0_1] : memref<16x16xf32, #tpu.memory_space<vmem>>, vector<16x16xf32>
    %c0_2 = arith.constant 0 : index
    %c0_3 = arith.constant 0 : index
    %4 = vector.load %arg3[%c0_2, %c0_3] : memref<16x32xf32, #tpu.memory_space<vmem>>, vector<16x32xf32>
    %cst = arith.constant dense<0.000000e+00> : vector<16x32xf32>
    %5 = tpu.matmul %3, %4, %cst {dimension_numbers = #tpu.dot_dimension_numbers<[1], [0], [0], [1], [0, 0, 1, 1], [], []>} : vector<16x16xf32>, vector<16x32xf32>, vector<16x32xf32> -> vector<16x32xf32>
    %c0_4 = arith.constant 0 : index
    %c0_5 = arith.constant 0 : index
    %6 = vector.load %arg5[%c0_4, %c0_5] : memref<16x32xf32, #tpu.memory_space<vmem>>, vector<16x32xf32>
    tpu.vector_store %arg5[%c0_4, %c0_5], %5 {strides = array<i32>} : memref<16x32xf32, #tpu.memory_space<vmem>>, vector<16x32xf32>,
    %c0_6 = arith.constant 0 : index
    %c0_7 = arith.constant 0 : index
    %7 = vector.load %arg4[%c0_6, %c0_7] : memref<1x32xf32, #tpu.memory_space<vmem>>, vector<1x32xf32>
    %8 = vector.shape_cast %7 : vector<1x32xf32> to vector<1x32xf32>
    %9 = vector.broadcast %8 : vector<1x32xf32> to vector<2x32xf32>
    %c0_8 = arith.constant 0 : index
    %c0_9 = arith.constant 0 : index
    %10 = vector.load %arg6[%c0_8, %c0_9] : memref<2x32xf32, #tpu.memory_space<vmem>>, vector<2x32xf32>
    %c0_10 = arith.constant 0 : index
    %c0_11 = arith.constant 0 : index
    %11 = vector.load %arg7[%c0_10, %c0_11] : memref<2x32xf32, #tpu.memory_space<vmem>>, vector<2x32xf32>
    %c0_12 = arith.constant 0 : index
    %c0_13 = arith.constant 0 : index
    %12 = vector.load %arg5[%c0_12, %c0_13] : memref<16x32xf32, #tpu.memory_space<vmem>>, vector<2x32xf32>
    %cst_14 = arith.constant 8.000000e-01 : f32
    %13 = vector.broadcast %cst_14 : f32 to vector<2x32xf32>
    %14 = arith.mulf %13, %10 : vector<2x32xf32>
    %cst_15 = arith.constant 1.000000e+00 : f32
    %15 = vector.broadcast %cst_15 : f32 to vector<2x32xf32>
    %16 = arith.subf %15, %11 : vector<2x32xf32>
    %17 = arith.mulf %14, %16 : vector<2x32xf32>
    %18 = arith.addf %12, %17 : vector<2x32xf32>
    %cst_16 = arith.constant 0.000000e+00 : f32
    %19 = vector.broadcast %cst_16 : f32 to vector<2x32xf32>
    %20 = arith.maximumf %18, %19 : vector<2x32xf32>
    %21 = arith.addf %20, %9 : vector<2x32xf32>
    %cst_17 = arith.constant 0.000000e+00 : f32
    %22 = vector.broadcast %cst_17 : f32 to vector<2x32xf32>
    %23 = arith.cmpf ogt, %21, %22 : vector<2x32xf32>
    %24 = arith.extui %23 : vector<2x32xi1> to vector<2x32xi32>
    %25 = arith.sitofp %24 : vector<2x32xi32> to vector<2x32xf32>
    %c0_18 = arith.constant 0 : index
    %c0_19 = arith.constant 0 : index
    %26 = vector.load %arg5[%c0_18, %c0_19] : memref<16x32xf32, #tpu.memory_space<vmem>>, vector<2x32xf32>
    tpu.vector_store %arg5[%c0_18, %c0_19], %25 {strides = array<i32>} : memref<16x32xf32, #tpu.memory_space<vmem>>, vector<2x32xf32>,
    %c2 = arith.constant 2 : index
    %c0_20 = arith.constant 0 : index
    %27 = vector.load %arg5[%c2, %c0_20] : memref<16x32xf32, #tpu.memory_space<vmem>>, vector<2x32xf32>
    %cst_21 = arith.constant 8.000000e-01 : f32
    %28 = vector.broadcast %cst_21 : f32 to vector<2x32xf32>
    %29 = arith.mulf %28, %20 : vector<2x32xf32>
    %cst_22 = arith.constant 1.000000e+00 : f32
    %30 = vector.broadcast %cst_22 : f32 to vector<2x32xf32>
    %31 = arith.subf %30, %25 : vector<2x32xf32>
    %32 = arith.mulf %29, %31 : vector<2x32xf32>
    %33 = arith.addf %27, %32 : vector<2x32xf32>
    %cst_23 = arith.constant 0.000000e+00 : f32
    %34 = vector.broadcast %cst_23 : f32 to vector<2x32xf32>
    %35 = arith.maximumf %33, %34 : vector<2x32xf32>
    %36 = arith.addf %35, %9 : vector<2x32xf32>
    %cst_24 = arith.constant 0.000000e+00 : f32
    %37 = vector.broadcast %cst_24 : f32 to vector<2x32xf32>
    %38 = arith.cmpf ogt, %36, %37 : vector<2x32xf32>
    %39 = arith.extui %38 : vector<2x32xi1> to vector<2x32xi32>
    %40 = arith.sitofp %39 : vector<2x32xi32> to vector<2x32xf32>
    %c2_25 = arith.constant 2 : index
    %c0_26 = arith.constant 0 : index
    %41 = vector.load %arg5[%c2_25, %c0_26] : memref<16x32xf32, #tpu.memory_space<vmem>>, vector<2x32xf32>
    tpu.vector_store %arg5[%c2_25, %c0_26], %40 {strides = array<i32>} : memref<16x32xf32, #tpu.memory_space<vmem>>, vector<2x32xf32>,
    %c4 = arith.constant 4 : index
    %c0_27 = arith.constant 0 : index
    %42 = vector.load %arg5[%c4, %c0_27] : memref<16x32xf32, #tpu.memory_space<vmem>>, vector<2x32xf32>
    %cst_28 = arith.constant 8.000000e-01 : f32
    %43 = vector.broadcast %cst_28 : f32 to vector<2x32xf32>
    %44 = arith.mulf %43, %35 : vector<2x32xf32>
    %cst_29 = arith.constant 1.000000e+00 : f32
    %45 = vector.broadcast %cst_29 : f32 to vector<2x32xf32>
    %46 = arith.subf %45, %40 : vector<2x32xf32>
    %47 = arith.mulf %44, %46 : vector<2x32xf32>
    %48 = arith.addf %42, %47 : vector<2x32xf32>
    %cst_30 = arith.constant 0.000000e+00 : f32
    %49 = vector.broadcast %cst_30 : f32 to vector<2x32xf32>
    %50 = arith.maximumf %48, %49 : vector<2x32xf32>
    %51 = arith.addf %50, %9 : vector<2x32xf32>
    %cst_31 = arith.constant 0.000000e+00 : f32
    %52 = vector.broadcast %cst_31 : f32 to vector<2x32xf32>
    %53 = arith.cmpf ogt, %51, %52 : vector<2x32xf32>
    %54 = arith.extui %53 : vector<2x32xi1> to vector<2x32xi32>
    %55 = arith.sitofp %54 : vector<2x32xi32> to vector<2x32xf32>
    %c4_32 = arith.constant 4 : index
    %c0_33 = arith.constant 0 : index
    %56 = vector.load %arg5[%c4_32, %c0_33] : memref<16x32xf32, #tpu.memory_space<vmem>>, vector<2x32xf32>
    tpu.vector_store %arg5[%c4_32, %c0_33], %55 {strides = array<i32>} : memref<16x32xf32, #tpu.memory_space<vmem>>, vector<2x32xf32>,
    %c6 = arith.constant 6 : index
    %c0_34 = arith.constant 0 : index
    %57 = vector.load %arg5[%c6, %c0_34] : memref<16x32xf32, #tpu.memory_space<vmem>>, vector<2x32xf32>
    %cst_35 = arith.constant 8.000000e-01 : f32
    %58 = vector.broadcast %cst_35 : f32 to vector<2x32xf32>
    %59 = arith.mulf %58, %50 : vector<2x32xf32>
    %cst_36 = arith.constant 1.000000e+00 : f32
    %60 = vector.broadcast %cst_36 : f32 to vector<2x32xf32>
    %61 = arith.subf %60, %55 : vector<2x32xf32>
    %62 = arith.mulf %59, %61 : vector<2x32xf32>
    %63 = arith.addf %57, %62 : vector<2x32xf32>
    %cst_37 = arith.constant 0.000000e+00 : f32
    %64 = vector.broadcast %cst_37 : f32 to vector<2x32xf32>
    %65 = arith.maximumf %63, %64 : vector<2x32xf32>
    %66 = arith.addf %65, %9 : vector<2x32xf32>
    %cst_38 = arith.constant 0.000000e+00 : f32
    %67 = vector.broadcast %cst_38 : f32 to vector<2x32xf32>
    %68 = arith.cmpf ogt, %66, %67 : vector<2x32xf32>
    %69 = arith.extui %68 : vector<2x32xi1> to vector<2x32xi32>
    %70 = arith.sitofp %69 : vector<2x32xi32> to vector<2x32xf32>
    %c6_39 = arith.constant 6 : index
    %c0_40 = arith.constant 0 : index
    %71 = vector.load %arg5[%c6_39, %c0_40] : memref<16x32xf32, #tpu.memory_space<vmem>>, vector<2x32xf32>
    tpu.vector_store %arg5[%c6_39, %c0_40], %70 {strides = array<i32>} : memref<16x32xf32, #tpu.memory_space<vmem>>, vector<2x32xf32>,
    %c8 = arith.constant 8 : index
    %c0_41 = arith.constant 0 : index
    %72 = vector.load %arg5[%c8, %c0_41] : memref<16x32xf32, #tpu.memory_space<vmem>>, vector<2x32xf32>
    %cst_42 = arith.constant 8.000000e-01 : f32
    %73 = vector.broadcast %cst_42 : f32 to vector<2x32xf32>
    %74 = arith.mulf %73, %65 : vector<2x32xf32>
    %cst_43 = arith.constant 1.000000e+00 : f32
    %75 = vector.broadcast %cst_43 : f32 to vector<2x32xf32>
    %76 = arith.subf %75, %70 : vector<2x32xf32>
    %77 = arith.mulf %74, %76 : vector<2x32xf32>
    %78 = arith.addf %72, %77 : vector<2x32xf32>
    %cst_44 = arith.constant 0.000000e+00 : f32
    %79 = vector.broadcast %cst_44 : f32 to vector<2x32xf32>
    %80 = arith.maximumf %78, %79 : vector<2x32xf32>
    %81 = arith.addf %80, %9 : vector<2x32xf32>
    %cst_45 = arith.constant 0.000000e+00 : f32
    %82 = vector.broadcast %cst_45 : f32 to vector<2x32xf32>
    %83 = arith.cmpf ogt, %81, %82 : vector<2x32xf32>
    %84 = arith.extui %83 : vector<2x32xi1> to vector<2x32xi32>
    %85 = arith.sitofp %84 : vector<2x32xi32> to vector<2x32xf32>
    %c8_46 = arith.constant 8 : index
    %c0_47 = arith.constant 0 : index
    %86 = vector.load %arg5[%c8_46, %c0_47] : memref<16x32xf32, #tpu.memory_space<vmem>>, vector<2x32xf32>
    tpu.vector_store %arg5[%c8_46, %c0_47], %85 {strides = array<i32>} : memref<16x32xf32, #tpu.memory_space<vmem>>, vector<2x32xf32>,
    %c10 = arith.constant 10 : index
    %c0_48 = arith.constant 0 : index
    %87 = vector.load %arg5[%c10, %c0_48] : memref<16x32xf32, #tpu.memory_space<vmem>>, vector<2x32xf32>
    %cst_49 = arith.constant 8.000000e-01 : f32
    %88 = vector.broadcast %cst_49 : f32 to vector<2x32xf32>
    %89 = arith.mulf %88, %80 : vector<2x32xf32>
    %cst_50 = arith.constant 1.000000e+00 : f32
    %90 = vector.broadcast %cst_50 : f32 to vector<2x32xf32>
    %91 = arith.subf %90, %85 : vector<2x32xf32>
    %92 = arith.mulf %89, %91 : vector<2x32xf32>
    %93 = arith.addf %87, %92 : vector<2x32xf32>
    %cst_51 = arith.constant 0.000000e+00 : f32
    %94 = vector.broadcast %cst_51 : f32 to vector<2x32xf32>
    %95 = arith.maximumf %93, %94 : vector<2x32xf32>
    %96 = arith.addf %95, %9 : vector<2x32xf32>
    %cst_52 = arith.constant 0.000000e+00 : f32
    %97 = vector.broadcast %cst_52 : f32 to vector<2x32xf32>
    %98 = arith.cmpf ogt, %96, %97 : vector<2x32xf32>
    %99 = arith.extui %98 : vector<2x32xi1> to vector<2x32xi32>
    %100 = arith.sitofp %99 : vector<2x32xi32> to vector<2x32xf32>
    %c10_53 = arith.constant 10 : index
    %c0_54 = arith.constant 0 : index
    %101 = vector.load %arg5[%c10_53, %c0_54] : memref<16x32xf32, #tpu.memory_space<vmem>>, vector<2x32xf32>
    tpu.vector_store %arg5[%c10_53, %c0_54], %100 {strides = array<i32>} : memref<16x32xf32, #tpu.memory_space<vmem>>, vector<2x32xf32>,
    %c12 = arith.constant 12 : index
    %c0_55 = arith.constant 0 : index
    %102 = vector.load %arg5[%c12, %c0_55] : memref<16x32xf32, #tpu.memory_space<vmem>>, vector<2x32xf32>
    %cst_56 = arith.constant 8.000000e-01 : f32
    %103 = vector.broadcast %cst_56 : f32 to vector<2x32xf32>
    %104 = arith.mulf %103, %95 : vector<2x32xf32>
    %cst_57 = arith.constant 1.000000e+00 : f32
    %105 = vector.broadcast %cst_57 : f32 to vector<2x32xf32>
    %106 = arith.subf %105, %100 : vector<2x32xf32>
    %107 = arith.mulf %104, %106 : vector<2x32xf32>
    %108 = arith.addf %102, %107 : vector<2x32xf32>
    %cst_58 = arith.constant 0.000000e+00 : f32
    %109 = vector.broadcast %cst_58 : f32 to vector<2x32xf32>
    %110 = arith.maximumf %108, %109 : vector<2x32xf32>
    %111 = arith.addf %110, %9 : vector<2x32xf32>
    %cst_59 = arith.constant 0.000000e+00 : f32
    %112 = vector.broadcast %cst_59 : f32 to vector<2x32xf32>
    %113 = arith.cmpf ogt, %111, %112 : vector<2x32xf32>
    %114 = arith.extui %113 : vector<2x32xi1> to vector<2x32xi32>
    %115 = arith.sitofp %114 : vector<2x32xi32> to vector<2x32xf32>
    %c12_60 = arith.constant 12 : index
    %c0_61 = arith.constant 0 : index
    %116 = vector.load %arg5[%c12_60, %c0_61] : memref<16x32xf32, #tpu.memory_space<vmem>>, vector<2x32xf32>
    tpu.vector_store %arg5[%c12_60, %c0_61], %115 {strides = array<i32>} : memref<16x32xf32, #tpu.memory_space<vmem>>, vector<2x32xf32>,
    %c14 = arith.constant 14 : index
    %c0_62 = arith.constant 0 : index
    %117 = vector.load %arg5[%c14, %c0_62] : memref<16x32xf32, #tpu.memory_space<vmem>>, vector<2x32xf32>
    %cst_63 = arith.constant 8.000000e-01 : f32
    %118 = vector.broadcast %cst_63 : f32 to vector<2x32xf32>
    %119 = arith.mulf %118, %110 : vector<2x32xf32>
    %cst_64 = arith.constant 1.000000e+00 : f32
    %120 = vector.broadcast %cst_64 : f32 to vector<2x32xf32>
    %121 = arith.subf %120, %115 : vector<2x32xf32>
    %122 = arith.mulf %119, %121 : vector<2x32xf32>
    %123 = arith.addf %117, %122 : vector<2x32xf32>
    %cst_65 = arith.constant 0.000000e+00 : f32
    %124 = vector.broadcast %cst_65 : f32 to vector<2x32xf32>
    %125 = arith.maximumf %123, %124 : vector<2x32xf32>
    %126 = arith.addf %125, %9 : vector<2x32xf32>
    %cst_66 = arith.constant 0.000000e+00 : f32
    %127 = vector.broadcast %cst_66 : f32 to vector<2x32xf32>
    %128 = arith.cmpf ogt, %126, %127 : vector<2x32xf32>
    %129 = arith.extui %128 : vector<2x32xi1> to vector<2x32xi32>
    %130 = arith.sitofp %129 : vector<2x32xi32> to vector<2x32xf32>
    %c14_67 = arith.constant 14 : index
    %c0_68 = arith.constant 0 : index
    %131 = vector.load %arg5[%c14_67, %c0_68] : memref<16x32xf32, #tpu.memory_space<vmem>>, vector<2x32xf32>
    tpu.vector_store %arg5[%c14_67, %c0_68], %130 {strides = array<i32>} : memref<16x32xf32, #tpu.memory_space<vmem>>, vector<2x32xf32>,
    %c0_69 = arith.constant 0 : index
    %c0_70 = arith.constant 0 : index
    %132 = vector.load %arg6[%c0_69, %c0_70] : memref<2x32xf32, #tpu.memory_space<vmem>>, vector<2x32xf32>
    tpu.vector_store %arg6[%c0_69, %c0_70], %125 {strides = array<i32>} : memref<2x32xf32, #tpu.memory_space<vmem>>, vector<2x32xf32>,
    %c0_71 = arith.constant 0 : index
    %c0_72 = arith.constant 0 : index
    %133 = vector.load %arg7[%c0_71, %c0_72] : memref<2x32xf32, #tpu.memory_space<vmem>>, vector<2x32xf32>
    tpu.vector_store %arg7[%c0_71, %c0_72], %130 {strides = array<i32>} : memref<2x32xf32, #tpu.memory_space<vmem>>, vector<2x32xf32>,
    return
  }
  func.func @transform_0(%arg0: i32, %arg1: i32) -> (i32, i32) {
    %c0_i32 = arith.constant 0 : i32
    %c0_i32_0 = arith.constant 0 : i32
    return %arg1, %c0_i32 : i32, i32
  }
  func.func @transform_1(%arg0: i32, %arg1: i32) -> (i32, i32) {
    %c0_i32 = arith.constant 0 : i32
    %c0_i32_0 = arith.constant 0 : i32
    return %c0_i32, %arg0 : i32, i32
  }
  func.func @transform_2(%arg0: i32, %arg1: i32) -> (i32, i32) {
    %c0_i32 = arith.constant 0 : i32
    %c0_i32_0 = arith.constant 0 : i32
    return %c0_i32, %arg0 : i32, i32
  }
  func.func @transform_3(%arg0: i32, %arg1: i32) -> (i32, i32) {
    %c0_i32 = arith.constant 0 : i32
    return %arg1, %arg0 : i32, i32
  }
}

</mosaic_0001>

<bundles_post_ra>
// kernel: tpu_custom_call.1
= control target key start
LH: loop header
LB: loop body
LE: loop exit
PB: predicated region body
PF: predicated region fallthrough
CT: control target
= control target key end

     0   :  { %8 = vsyncpa [#allocation5], 0  ;;  %s467_s0 = inlined_call_operand.hbm [shape: f32[16,16], index: 0, kind: input, shape index: {}]   ;;  %s468_s1 = inlined_call_operand.hbm [shape: f32[16,32], index: 1, kind: input, shape index: {}]   ;;  %s469_s2 = inlined_call_operand.vmem [shape: f32[1,32], index: 2, kind: input, shape index: {}]   ;;  %s470_s3 = inlined_call_operand.hbm [shape: f32[16,32], index: 3, kind: output, shape index: {}]  }
   0x1   :  { %9 = vsyncpa [#allocation8], 0 }
   0x2   :  { %10 = vsyncpa [#allocation6], 0  ;;  %s361_s12 = smov [#allocation4]   ;;  %s289_s16 = scalar_lea.hbm %s467_s0, 256 }
   0x3   :  { %s16_s13 = sshll.u32 %s361_s12, 4  ;;  %p290_p0 = scmp.ne.s32.totalorder %s467_s0, %s289_s16  ;;  %s17_s13 = int_to_ptr.vmem [resolvable:$true] %s16_s13 }
   0x4   :  { %p293_p1 = scmp.lt.u32.totalorder %s289_s16, %s467_s0 }
   0x6   :  { %p295_p2 = pnand %p293_p1, %p290_p0 }
   0x8   :  { %298 = shalt.err (!%p295_p2)
}
   0x9   :  { %s299_s21 = scalar_lea.vmem %s17_s13, 256  ;;  %p304_p4 = scmp.lt.s32.totalorder %s17_s13, %s17_s13 }
   0xa   :  { %p300_p3 = scmp.ne.s32.totalorder %s17_s13, %s299_s21  ;;  %p305_p5 = scmp.lt.s32.totalorder %s299_s21, %s299_s21 }
   0xc   :  { %p306_p6 = por %p305_p5, %p304_p4 }
   0xe   :  { %p307_p7 = pnand %p306_p6, %p300_p3 }
  0x10   :  { %310 = shalt.err (!%p307_p7)
}
  0x11   :  { %s362_s22 = smov 128   ;;  %s363_s23 = smov 8  }
  0x12   :  { %22 = dma.hbm_to_vmem [thread:$0]  %s467_s0, 256, %s17_s13, [#allocation5], %s362_s22, %s362_s22, %s363_s23  }
  0x13   :  { %s364_s26 = smov [#allocation7]   ;;  %s311_s30 = scalar_lea.hbm %s468_s1, 256 }
  0x14   :  { %s28_s27 = sshll.u32 %s364_s26, 4  ;;  %p312_p8 = scmp.ne.s32.totalorder %s468_s1, %s311_s30  ;;  %s29_s27 = int_to_ptr.vmem [resolvable:$true] %s28_s27 }
  0x15   :  { %p315_p9 = scmp.lt.u32.totalorder %s311_s30, %s468_s1 }
  0x17   :  { %p317_p10 = pnand %p315_p9, %p312_p8 }
  0x19   :  { %320 = shalt.err (!%p317_p10)
}
  0x1a   :  { %s321_s8 = scalar_lea.vmem %s29_s27, 256  ;;  %p326_p12 = scmp.lt.s32.totalorder %s29_s27, %s29_s27 }
  0x1b   :  { %p322_p11 = scmp.ne.s32.totalorder %s29_s27, %s321_s8  ;;  %p327_p13 = scmp.lt.s32.totalorder %s321_s8, %s321_s8 }
  0x1d   :  { %p328_p0 = por %p327_p13, %p326_p12 }
  0x1f   :  { %p329_p1 = pnand %p328_p0, %p322_p11 }
  0x21   :  { %332 = shalt.err (!%p329_p1)
}
  0x22   :  { %34 = dma.hbm_to_vmem [thread:$0]  %s468_s1, 256, %s29_s27, [#allocation8], %s362_s22, %s362_s22, %s363_s23  }
  0x23   :  { %355 = dma.done.wait [#allocation5], 256  }
  0x24   :  { %356 = vsyncadd [#allocation5], 4294967040 }
  0x25   :  { %357 = dma.done.wait [#allocation8], 256  }
  0x26   :  { %358 = vsyncadd [#allocation8], 4294967040  ;;  %vm54_vm0 = vcmask 130048   ;;  %v52_v0 = vld [vmem:[#allocation7] sm:$0xff]  ;;  %v53_v1 = vld [vmem:[#allocation7 + $0x8] sm:$0xff]  ;;  %vm47_vm1 = vcmask 254976  }
  0x27   :  { %v50_v2 = vld [vmem:[#allocation4] sm:$0xff]  ;;  %v279_v3 = vpack.c.bf16 %v53_v1, %v52_v0  ;;  %v51_v4 = vld [vmem:[#allocation4 + $0x8] sm:$0xff]  ;;  %v365_v5 = vmov 0.0   ;;  %vm136_vm2 = vcmask 261120   ;;  %v424_v15 = vld [vmem:[%s469_s2] ss:$0 sm:$0xff] }
  0x28   :  { %276 = vmatprep.mubr.msk.f32.mxu0 %vm54_vm0, %v50_v2  ;;  %48 = vst.msk [vmem:[#allocation2] sm:$0x3] %vm47_vm1, %v365_v5  ;;  %49 = vst.msk [vmem:[#allocation3] sm:$0x3] %vm47_vm1, %v365_v5  ;;  %s366_s2 = smov [#allocation9]  }
  0x29   :  { %280 = vmatprep.subr.bf16.mxu0 %v279_v3  ;;  %s244_s11 = sshll.u32 %s366_s2, 4  ;;  %s245_s11 = int_to_ptr.vmem [resolvable:$true] %s244_s11 }
  0x2a   :  { %282 = vmatpush3.bf16.msra.mxu0 %v279_v3  ;;  %s333_s12 = scalar_lea.vmem %s245_s11, 256  ;;  %p338_p3 = scmp.lt.s32.totalorder %s245_s11, %s245_s11 }
  0x2b   :  { %p334_p2 = scmp.ne.s32.totalorder %s245_s11, %s333_s12  ;;  %p339_p4 = scmp.lt.s32.totalorder %s333_s12, %s333_s12 }
  0x2d   :  { %277 = vmatmul.mubr.msk.f32.vlgmr.msra.gmra.mrb[0].mxu0 %vm54_vm0, %v51_v4  ;;  %p340_p5 = por %p339_p4, %p338_p3 }
  0x2f   :  { %v146_v6 = vld [vmem:[#allocation2] sm:$0x3]  ;;  %v147_v7 = vld [vmem:[#allocation3] sm:$0x3]  ;;  %p341_p6 = pnand %p340_p5, %p334_p2 }
  0x30   :  { %v149_v10 = vmul.f32 0.8, %v146_v6  ;;  %v150_v11 = vsub.f32 1.0, %v147_v7 }
  0x32   :  { %v151_v12 = vmul.f32 %v150_v11, %v149_v10 }
 0x100   :  { %v278_v8 = vpop.f32.mrb[0].mxu0 }
 0x101   :  { %138 = vst.msk [vmem:[#allocation9 + $0x8] sm:$0xff] %vm136_vm2, %v278_v8  ;;  %v127_v9 = vpop.f32.mrb[1].mxu0 }
 0x102   :  { %137 = vst.msk [vmem:[#allocation9] sm:$0xff] %vm136_vm2, %v127_v9 }
 0x108   :  { %v193_v46 = vld [vmem:[#allocation9 + $0x8] sm:$0x3]  ;;  %v204_v54 = vld [vmem:[#allocation9 + $0xa] sm:$0x3]  ;;  %v215_v62 = vld [vmem:[#allocation9 + $0xc] sm:$0x3] }
 0x109   :  { %v148_v13 = vld [vmem:[#allocation9] sm:$0x3]  ;;  %v160_v22 = vld [vmem:[#allocation9 + $0x2] sm:$0x3]  ;;  %v171_v30 = vld [vmem:[#allocation9 + $0x4] sm:$0x3] }
 0x10a   :  { %v152_v14 = vadd.f32 %v151_v12, %v148_v13  ;;  %v182_v38 = vld [vmem:[#allocation9 + $0x6] sm:$0x3]  ;;  %v226_v7 = vld [vmem:[#allocation9 + $0xe] sm:$0x3] }
 0x10c   :  { %v153_v16 = vmax.f32 %v152_v14, 0.0 }
 0x10e   :  { %v154_v17 = vadd.f32 %v424_v15, %v153_v16  ;;  %v161_v19 = vmul.f32 0.8, %v153_v16 }
 0x110   :  { %vm155_vm3 = vcmp.gt.f32.partialorder %v154_v17, 0.0 }
 0x111   :  { %v260_v18 = vsel %vm155_vm3, 1.0, %v365_v5 }
 0x112   :  { %159 = vst.msk [vmem:[#allocation9] sm:$0x3] %vm47_vm1, %v260_v18  ;;  %v162_v20 = vsub.f32 1.0, %v260_v18 }
 0x114   :  { %v163_v21 = vmul.f32 %v162_v20, %v161_v19 }
 0x116   :  { %v164_v23 = vadd.f32 %v163_v21, %v160_v22 }
 0x118   :  { %v165_v24 = vmax.f32 %v164_v23, 0.0 }
 0x11a   :  { %v166_v25 = vadd.f32 %v424_v15, %v165_v24  ;;  %v172_v27 = vmul.f32 0.8, %v165_v24 }
 0x11c   :  { %vm167_vm4 = vcmp.gt.f32.partialorder %v166_v25, 0.0 }
 0x11d   :  { %v261_v26 = vsel %vm167_vm4, 1.0, %v365_v5 }
 0x11e   :  { %170 = vst.msk [vmem:[#allocation9 + $0x2] sm:$0x3] %vm47_vm1, %v261_v26  ;;  %v173_v28 = vsub.f32 1.0, %v261_v26 }
 0x120   :  { %v174_v29 = vmul.f32 %v173_v28, %v172_v27 }
 0x122   :  { %v175_v31 = vadd.f32 %v174_v29, %v171_v30 }
 0x124   :  { %v176_v32 = vmax.f32 %v175_v31, 0.0 }
 0x126   :  { %v177_v33 = vadd.f32 %v424_v15, %v176_v32  ;;  %v183_v35 = vmul.f32 0.8, %v176_v32 }
 0x128   :  { %vm178_vm5 = vcmp.gt.f32.partialorder %v177_v33, 0.0 }
 0x129   :  { %v262_v34 = vsel %vm178_vm5, 1.0, %v365_v5 }
 0x12a   :  { %181 = vst.msk [vmem:[#allocation9 + $0x4] sm:$0x3] %vm47_vm1, %v262_v34  ;;  %v184_v36 = vsub.f32 1.0, %v262_v34 }
 0x12c   :  { %v185_v37 = vmul.f32 %v184_v36, %v183_v35 }
 0x12e   :  { %v186_v39 = vadd.f32 %v185_v37, %v182_v38 }
 0x130   :  { %v187_v40 = vmax.f32 %v186_v39, 0.0 }
 0x132   :  { %v188_v41 = vadd.f32 %v424_v15, %v187_v40  ;;  %v194_v43 = vmul.f32 0.8, %v187_v40 }
 0x134   :  { %vm189_vm6 = vcmp.gt.f32.partialorder %v188_v41, 0.0 }
 0x135   :  { %v263_v42 = vsel %vm189_vm6, 1.0, %v365_v5 }
 0x136   :  { %192 = vst.msk [vmem:[#allocation9 + $0x6] sm:$0x3] %vm47_vm1, %v263_v42  ;;  %v195_v44 = vsub.f32 1.0, %v263_v42 }
 0x138   :  { %v196_v45 = vmul.f32 %v195_v44, %v194_v43 }
 0x13a   :  { %v197_v47 = vadd.f32 %v196_v45, %v193_v46 }
 0x13c   :  { %v198_v48 = vmax.f32 %v197_v47, 0.0 }
 0x13e   :  { %v199_v49 = vadd.f32 %v424_v15, %v198_v48  ;;  %v205_v51 = vmul.f32 0.8, %v198_v48 }
 0x140   :  { %vm200_vm7 = vcmp.gt.f32.partialorder %v199_v49, 0.0 }
 0x141   :  { %v264_v50 = vsel %vm200_vm7, 1.0, %v365_v5 }
 0x142   :  { %203 = vst.msk [vmem:[#allocation9 + $0x8] sm:$0x3] %vm47_vm1, %v264_v50  ;;  %v206_v52 = vsub.f32 1.0, %v264_v50 }
 0x144   :  { %v207_v53 = vmul.f32 %v206_v52, %v205_v51 }
 0x146   :  { %v208_v55 = vadd.f32 %v207_v53, %v204_v54 }
 0x148   :  { %v209_v56 = vmax.f32 %v208_v55, 0.0 }
 0x14a   :  { %v210_v57 = vadd.f32 %v424_v15, %v209_v56  ;;  %v216_v59 = vmul.f32 0.8, %v209_v56 }
 0x14c   :  { %vm211_vm8 = vcmp.gt.f32.partialorder %v210_v57, 0.0 }
 0x14d   :  { %v265_v58 = vsel %vm211_vm8, 1.0, %v365_v5 }
 0x14e   :  { %214 = vst.msk [vmem:[#allocation9 + $0xa] sm:$0x3] %vm47_vm1, %v265_v58  ;;  %v217_v60 = vsub.f32 1.0, %v265_v58 }
 0x150   :  { %v218_v61 = vmul.f32 %v217_v60, %v216_v59 }
 0x152   :  { %v219_v63 = vadd.f32 %v218_v61, %v215_v62 }
 0x154   :  { %v220_v0 = vmax.f32 %v219_v63, 0.0 }
 0x156   :  { %v221_v1 = vadd.f32 %v424_v15, %v220_v0  ;;  %v227_v3 = vmul.f32 0.8, %v220_v0 }
 0x158   :  { %vm222_vm9 = vcmp.gt.f32.partialorder %v221_v1, 0.0 }
 0x159   :  { %v266_v2 = vsel %vm222_vm9, 1.0, %v365_v5 }
 0x15a   :  { %225 = vst.msk [vmem:[#allocation9 + $0xc] sm:$0x3] %vm47_vm1, %v266_v2  ;;  %v228_v4 = vsub.f32 1.0, %v266_v2 }
 0x15c   :  { %v229_v6 = vmul.f32 %v228_v4, %v227_v3 }
 0x15e   :  { %v230_v8 = vadd.f32 %v229_v6, %v226_v7 }
 0x160   :  { %v231_v9 = vmax.f32 %v230_v8, 0.0 }
 0x162   :  { %v232_v10 = vadd.f32 %v424_v15, %v231_v9  ;;  %237 = vst.msk [vmem:[#allocation2] sm:$0x3] %vm47_vm1, %v231_v9 }
 0x164   :  { %vm233_vm10 = vcmp.gt.f32.partialorder %v232_v10, 0.0 }
 0x165   :  { %v267_v11 = vsel %vm233_vm10, 1.0, %v365_v5 }
 0x166   :  { %236 = vst.msk [vmem:[#allocation9 + $0xe] sm:$0x3] %vm47_vm1, %v267_v11  ;;  %238 = vst.msk [vmem:[#allocation3] sm:$0x3] %vm47_vm1, %v267_v11 }
 0x167   :  { %344 = shalt.err (!%p341_p6)
}
 0x168   :  { %s345_s15 = scalar_lea.hbm %s470_s3, 256 }
 0x169   :  { %p346_p7 = scmp.ne.s32.totalorder %s470_s3, %s345_s15  ;;  %p349_p8 = scmp.lt.u32.totalorder %s345_s15, %s470_s3 }
 0x16b   :  { %p351_p9 = pnand %p349_p8, %p346_p7 }
 0x16d   :  { %354 = shalt.err (!%p351_p9)
}
 0x16e   :  { %250 = dma.vmem_to_hbm [thread:$0]  %s245_s11, 256, %s470_s3, [#allocation6], %s362_s22, %s362_s22, %s363_s23  }
 0x16f   :  { %359 = dma.done.wait [#allocation6], 256  }
 0x170   :  { %360 = vsyncadd [#allocation6], 4294967040 }
 0x171   :  { %254 = vsyncpa [#allocation5], 1 }
 0x172   :  { %255 = vsyncpa [#allocation8], 1 }
 0x173   :  { %256 = vsyncpa [#allocation6], 1 }

</bundles_post_ra>
